<compile_context>
chip_gen: v5e
topology: v5e:2x2
jax: 0.10.0
libtpu: 0.0.40
codegen_flags: <defaults>
</compile_context>

<pallas_src>
import jax
import jax.numpy as jnp
from jax import lax
from jax.experimental import pallas as pl
from jax.experimental.pallas import tpu as pltpu


def _encoder_block_kernel(x_ref, w1_ref, w2_ref, b1_ref, b2_ref, o_ref,
                          xpad_ref, ypad_ref):
    # x_ref   : (H, W*Cin)          bf16, one batch element, channels folded into lanes
    # w1_ref  : (3, W*Cin,  W*Cout) bf16 banded conv1 weights (one slab per dy)
    # w2_ref  : (3, W*Cout, W*Cout) bf16 banded conv2 weights
    # b1_ref  : (1, W*Cout)         f32 bias, pre-tiled over W
    # b2_ref  : (1, W*Cout)         f32 bias, pre-tiled over W
    # o_ref   : (H, W*Cout)         f32 output (lane-dense)
    # xpad_ref: (H+2, W*Cin)        bf16 scratch: conv1 input + vertical zero halo
    # ypad_ref: (H+2, W*Cout)       bf16 scratch: intermediate + vertical zero halo
    H = o_ref.shape[0]

    # ---------------- conv1 + ReLU ----------------
    # In-kernel vertical zero padding (rows 0 and H+1 stay zero).
    xpad_ref[...] = jnp.zeros_like(xpad_ref)
    xpad_ref[pl.ds(1, H), :] = x_ref[...]

    acc = jnp.dot(xpad_ref[pl.ds(0, H), :], w1_ref[0],
                  preferred_element_type=jnp.float32)
    acc += jnp.dot(xpad_ref[pl.ds(1, H), :], w1_ref[1],
                   preferred_element_type=jnp.float32)
    acc += jnp.dot(xpad_ref[pl.ds(2, H), :], w1_ref[2],
                   preferred_element_type=jnp.float32)
    y = jnp.maximum(acc + b1_ref[...], 0.0)          # (H, W*Cout), f32

    # ---------------- conv2 + ReLU ----------------
    ypad_ref[...] = jnp.zeros_like(ypad_ref)
    ypad_ref[pl.ds(1, H), :] = y.astype(ypad_ref.dtype)

    acc2 = jnp.dot(ypad_ref[pl.ds(0, H), :], w2_ref[0],
                   preferred_element_type=jnp.float32)
    acc2 += jnp.dot(ypad_ref[pl.ds(1, H), :], w2_ref[1],
                    preferred_element_type=jnp.float32)
    acc2 += jnp.dot(ypad_ref[pl.ds(2, H), :], w2_ref[2],
                    preferred_element_type=jnp.float32)
    o_ref[...] = jnp.maximum(acc2 + b2_ref[...], 0.0).astype(o_ref.dtype)


def _banded_weights(w_oihw, width):
    """Fold the horizontal taps (kx) and horizontal zero-padding of a 3x3 conv
    into per-dy banded matmul weights of shape (3, W*Cin, W*Cout).

    band[dy, w'*Cin+ci, w*Cout+co] = w[dy, w'-w+1, ci, co] if 0 <= w'-w+1 < 3 else 0
    so that  conv_row_dy = X_rows[dy:dy+H, :] @ band[dy].
    (Only suitable for small W*C — the slab is W/3x larger than the raw weights.)
    """
    w_hwio = jnp.transpose(w_oihw, (2, 3, 1, 0))       # (3, 3, Cin, Cout)
    kh, kw, cin, cout = w_hwio.shape
    w_in = jnp.arange(width)                           # input column  w'
    w_out = jnp.arange(width)                          # output column w
    kx = w_in[:, None] - w_out[None, :] + 1            # (W, W)
    valid = (kx >= 0) & (kx < kw)
    kx = jnp.clip(kx, 0, kw - 1)
    band = w_hwio[:, kx, :, :]                         # (3, W, W, Cin, Cout)
    band = band * valid[None, :, :, None, None].astype(band.dtype)
    band = jnp.transpose(band, (0, 1, 3, 2, 4))        # (3, W, Cin, W, Cout)
    return band.reshape(kh, width * cin, width * cout)


def init_encoder_block_params(key, in_channels, out_channels):
    """Deterministic synthetic params with PyTorch Conv2d shapes (OIHW)."""
    k1, k2, k3, k4 = jax.random.split(key, 4)
    w1 = jax.random.normal(k1, (out_channels, in_channels, 3, 3), jnp.float32) * 0.1
    b1 = jax.random.normal(k2, (out_channels,), jnp.float32) * 0.1
    w2 = jax.random.normal(k3, (out_channels, out_channels, 3, 3), jnp.float32) * 0.1
    b2 = jax.random.normal(k4, (out_channels,), jnp.float32) * 0.1
    return (w1, b1, w2, b2)


@jax.jit
def encoder_block_forward(x_nchw, w1, b1, w2, b2):
    """EncoderBlock.forward: relu(conv2(relu(conv1(x)))). NCHW in / NCHW out."""
    N, Cin, H, W = x_nchw.shape
    Cout = w1.shape[0]

    # NCHW -> (N, H, W*Cin) channels-last lane-flattened, bf16 for the MXU.
    x2d = jnp.transpose(x_nchw, (0, 2, 3, 1)).reshape(N, H, W * Cin)
    x2d = x2d.astype(jnp.bfloat16)

    w1b = _banded_weights(w1, W).astype(jnp.bfloat16)      # (3, W*Cin,  W*Cout)
    w2b = _banded_weights(w2, W).astype(jnp.bfloat16)      # (3, W*Cout, W*Cout)
    b1t = jnp.tile(b1, W).reshape(1, W * Cout).astype(jnp.float32)
    b2t = jnp.tile(b2, W).reshape(1, W * Cout).astype(jnp.float32)

    out2d = pl.pallas_call(
        _encoder_block_kernel,
        out_shape=jax.ShapeDtypeStruct((N, H, W * Cout), jnp.float32),
        grid=(N,),
        in_specs=[
            pl.BlockSpec((None, H, W * Cin), lambda n: (n, 0, 0)),
            pl.BlockSpec((3, W * Cin, W * Cout), lambda n: (0, 0, 0)),
            pl.BlockSpec((3, W * Cout, W * Cout), lambda n: (0, 0, 0)),
            pl.BlockSpec((1, W * Cout), lambda n: (0, 0)),
            pl.BlockSpec((1, W * Cout), lambda n: (0, 0)),
        ],
        out_specs=pl.BlockSpec((None, H, W * Cout), lambda n: (n, 0, 0)),
        scratch_shapes=[
            pltpu.VMEM((H + 2, W * Cin), jnp.bfloat16),
            pltpu.VMEM((H + 2, W * Cout), jnp.bfloat16),
        ],
        compiler_params=pltpu.CompilerParams(
            dimension_semantics=("parallel",)),
    )(x2d, w1b, w2b, b1t, b2t)

    # (N, H, W*Cout) -> NCHW to match the PyTorch module's output convention.
    out = out2d.reshape(N, H, W, Cout)
    return jnp.transpose(out, (0, 3, 1, 2))


def _reference_forward(x_nchw, w1, b1, w2, b2):
    """Pure-JAX f32 reference using lax.conv (NCHW/OIHW)."""
    dn = ("NCHW", "OIHW", "NCHW")
    y = lax.conv_general_dilated(x_nchw, w1, (1, 1), ((1, 1), (1, 1)),
                                 dimension_numbers=dn,
                                 precision=lax.Precision.HIGHEST)
    y = jnp.maximum(y + b1[None, :, None, None], 0.0)
    y = lax.conv_general_dilated(y, w2, (1, 1), ((1, 1), (1, 1)),
                                 dimension_numbers=dn,
                                 precision=lax.Precision.HIGHEST)
    y = jnp.maximum(y + b2[None, :, None, None], 0.0)
    return y


if __name__ == "__main__":
    key = jax.random.PRNGKey(0)
    k_x, k_p = jax.random.split(key)

    N, C_in, C_out, HW = 2, 4, 8, 16
    x = jax.random.normal(k_x, (N, C_in, HW, HW), jnp.float32)
    w1, b1, w2, b2 = init_encoder_block_params(k_p, C_in, C_out)

    out = encoder_block_forward(x, w1, b1, w2, b2)
    out = jax.block_until_ready(out)

    ref = _reference_forward(x, w1, b1, w2, b2)
    assert out.shape == (N, C_out, HW, HW), out.shape
    # bf16 MXU operands with f32 accumulation -> compare at bf16-level tolerance.
    assert jnp.allclose(out, ref, atol=5e-2, rtol=5e-2), float(
        jnp.max(jnp.abs(out - ref)))

    print("KERNEL_OK")
</pallas_src>

<mosaic_0001>
module attributes {stable_mosaic.version = 11 : i64} {
  func.func @_encoder_block_kernel(%arg0: i32, %arg1: memref<1x16x64xbf16, #tpu.memory_space<vmem>>, %arg2: memref<3x64x128xbf16, #tpu.memory_space<vmem>>, %arg3: memref<3x128x128xbf16, #tpu.memory_space<vmem>>, %arg4: memref<1x128xf32, #tpu.memory_space<vmem>>, %arg5: memref<1x128xf32, #tpu.memory_space<vmem>>, %arg6: memref<1x16x128xf32, #tpu.memory_space<vmem>>, %arg7: memref<18x64xbf16, #tpu.memory_space<vmem>>, %arg8: memref<18x128xbf16, #tpu.memory_space<vmem>>) attributes {dimension_semantics = [#tpu.dimension_semantics<parallel>], iteration_bounds = array<i64: 2>, scalar_prefetch = 0 : i64, scratch_operands = 2 : i64, tpu.core_type = #tpu.core_type<tc>, window_params = [{transform_indices = @transform_0, window_bounds = array<i64: 1, 16, 64>}, {pipeline_mode = #tpu.pipeline_mode<synchronous>, transform_indices = @transform_1, window_bounds = array<i64: 3, 64, 128>}, {pipeline_mode = #tpu.pipeline_mode<synchronous>, transform_indices = @transform_2, window_bounds = array<i64: 3, 128, 128>}, {pipeline_mode = #tpu.pipeline_mode<synchronous>, transform_indices = @transform_3, window_bounds = array<i64: 1, 128>}, {pipeline_mode = #tpu.pipeline_mode<synchronous>, transform_indices = @transform_4, window_bounds = array<i64: 1, 128>}, {transform_indices = @transform_5, window_bounds = array<i64: 1, 16, 128>}]} {
    %cst = arith.constant 0.000000e+00 : bf16
    %0 = vector.broadcast %cst : bf16 to vector<18x64xbf16>
    %c0 = arith.constant 0 : index
    %c0_0 = arith.constant 0 : index
    %1 = vector.load %arg7[%c0, %c0_0] : memref<18x64xbf16, #tpu.memory_space<vmem>>, vector<18x64xbf16>
    tpu.vector_store %arg7[%c0, %c0_0], %0 {strides = array<i32>} : memref<18x64xbf16, #tpu.memory_space<vmem>>, vector<18x64xbf16>,
    %c0_1 = arith.constant 0 : index
    %c0_2 = arith.constant 0 : index
    %c0_3 = arith.constant 0 : index
    %2 = vector.load %arg1[%c0_1, %c0_2, %c0_3] : memref<1x16x64xbf16, #tpu.memory_space<vmem>>, vector<1x16x64xbf16>
    %3 = vector.shape_cast %2 : vector<1x16x64xbf16> to vector<16x64xbf16>
    %c1 = arith.constant 1 : index
    %c0_4 = arith.constant 0 : index
    %4 = vector.load %arg7[%c1, %c0_4] : memref<18x64xbf16, #tpu.memory_space<vmem>>, vector<16x64xbf16>
    tpu.vector_store %arg7[%c1, %c0_4], %3 {strides = array<i32>} : memref<18x64xbf16, #tpu.memory_space<vmem>>, vector<16x64xbf16>,
    %c0_5 = arith.constant 0 : index
    %c0_6 = arith.constant 0 : index
    %5 = vector.load %arg7[%c0_5, %c0_6] : memref<18x64xbf16, #tpu.memory_space<vmem>>, vector<16x64xbf16>
    %c0_7 = arith.constant 0 : index
    %c0_8 = arith.constant 0 : index
    %c0_9 = arith.constant 0 : index
    %6 = vector.load %arg2[%c0_7, %c0_8, %c0_9] : memref<3x64x128xbf16, #tpu.memory_space<vmem>>, vector<1x64x128xbf16>
    %7 = vector.shape_cast %6 : vector<1x64x128xbf16> to vector<64x128xbf16>
    %cst_10 = arith.constant dense<0.000000e+00> : vector<16x128xf32>
    %8 = tpu.matmul %5, %7, %cst_10 {dimension_numbers = #tpu.dot_dimension_numbers<[1], [0], [0], [1], [0, 0, 1, 1], [], []>} : vector<16x64xbf16>, vector<64x128xbf16>, vector<16x128xf32> -> vector<16x128xf32>
    %c1_11 = arith.constant 1 : index
    %c0_12 = arith.constant 0 : index
    %9 = vector.load %arg7[%c1_11, %c0_12] : memref<18x64xbf16, #tpu.memory_space<vmem>>, vector<16x64xbf16>
    %c1_13 = arith.constant 1 : index
    %c0_14 = arith.constant 0 : index
    %c0_15 = arith.constant 0 : index
    %10 = vector.load %arg2[%c1_13, %c0_14, %c0_15] : memref<3x64x128xbf16, #tpu.memory_space<vmem>>, vector<1x64x128xbf16>
    %11 = vector.shape_cast %10 : vector<1x64x128xbf16> to vector<64x128xbf16>
    %cst_16 = arith.constant dense<0.000000e+00> : vector<16x128xf32>
    %12 = tpu.matmul %9, %11, %cst_16 {dimension_numbers = #tpu.dot_dimension_numbers<[1], [0], [0], [1], [0, 0, 1, 1], [], []>} : vector<16x64xbf16>, vector<64x128xbf16>, vector<16x128xf32> -> vector<16x128xf32>
    %13 = arith.addf %8, %12 : vector<16x128xf32>
    %c2 = arith.constant 2 : index
    %c0_17 = arith.constant 0 : index
    %14 = vector.load %arg7[%c2, %c0_17] : memref<18x64xbf16, #tpu.memory_space<vmem>>, vector<16x64xbf16>
    %c2_18 = arith.constant 2 : index
    %c0_19 = arith.constant 0 : index
    %c0_20 = arith.constant 0 : index
    %15 = vector.load %arg2[%c2_18, %c0_19, %c0_20] : memref<3x64x128xbf16, #tpu.memory_space<vmem>>, vector<1x64x128xbf16>
    %16 = vector.shape_cast %15 : vector<1x64x128xbf16> to vector<64x128xbf16>
    %cst_21 = arith.constant dense<0.000000e+00> : vector<16x128xf32>
    %17 = tpu.matmul %14, %16, %cst_21 {dimension_numbers = #tpu.dot_dimension_numbers<[1], [0], [0], [1], [0, 0, 1, 1], [], []>} : vector<16x64xbf16>, vector<64x128xbf16>, vector<16x128xf32> -> vector<16x128xf32>
    %18 = arith.addf %13, %17 : vector<16x128xf32>
    %c0_22 = arith.constant 0 : index
    %c0_23 = arith.constant 0 : index
    %19 = vector.load %arg4[%c0_22, %c0_23] : memref<1x128xf32, #tpu.memory_space<vmem>>, vector<1x128xf32>
    %20 = vector.broadcast %19 : vector<1x128xf32> to vector<16x128xf32>
    %21 = arith.addf %18, %20 : vector<16x128xf32>
    %cst_24 = arith.constant 0.000000e+00 : f32
    %22 = vector.broadcast %cst_24 : f32 to vector<16x128xf32>
    %23 = arith.maximumf %21, %22 : vector<16x128xf32>
    %cst_25 = arith.constant 0.000000e+00 : bf16
    %24 = vector.broadcast %cst_25 : bf16 to vector<18x128xbf16>
    %c0_26 = arith.constant 0 : index
    %c0_27 = arith.constant 0 : index
    %25 = vector.load %arg8[%c0_26, %c0_27] : memref<18x128xbf16, #tpu.memory_space<vmem>>, vector<18x128xbf16>
    tpu.vector_store %arg8[%c0_26, %c0_27], %24 {strides = array<i32>} : memref<18x128xbf16, #tpu.memory_space<vmem>>, vector<18x128xbf16>,
    %26 = arith.truncf %23 : vector<16x128xf32> to vector<16x128xbf16>
    %c1_28 = arith.constant 1 : index
    %c0_29 = arith.constant 0 : index
    %27 = vector.load %arg8[%c1_28, %c0_29] : memref<18x128xbf16, #tpu.memory_space<vmem>>, vector<16x128xbf16>
    tpu.vector_store %arg8[%c1_28, %c0_29], %26 {strides = array<i32>} : memref<18x128xbf16, #tpu.memory_space<vmem>>, vector<16x128xbf16>,
    %c0_30 = arith.constant 0 : index
    %c0_31 = arith.constant 0 : index
    %28 = vector.load %arg8[%c0_30, %c0_31] : memref<18x128xbf16, #tpu.memory_space<vmem>>, vector<16x128xbf16>
    %c0_32 = arith.constant 0 : index
    %c0_33 = arith.constant 0 : index
    %c0_34 = arith.constant 0 : index
    %29 = vector.load %arg3[%c0_32, %c0_33, %c0_34] : memref<3x128x128xbf16, #tpu.memory_space<vmem>>, vector<1x128x128xbf16>
    %30 = vector.shape_cast %29 : vector<1x128x128xbf16> to vector<128x128xbf16>
    %cst_35 = arith.constant dense<0.000000e+00> : vector<16x128xf32>
    %31 = tpu.matmul %28, %30, %cst_35 {dimension_numbers = #tpu.dot_dimension_numbers<[1], [0], [0], [1], [0, 0, 1, 1], [], []>} : vector<16x128xbf16>, vector<128x128xbf16>, vector<16x128xf32> -> vector<16x128xf32>
    %c1_36 = arith.constant 1 : index
    %c0_37 = arith.constant 0 : index
    %32 = vector.load %arg8[%c1_36, %c0_37] : memref<18x128xbf16, #tpu.memory_space<vmem>>, vector<16x128xbf16>
    %c1_38 = arith.constant 1 : index
    %c0_39 = arith.constant 0 : index
    %c0_40 = arith.constant 0 : index
    %33 = vector.load %arg3[%c1_38, %c0_39, %c0_40] : memref<3x128x128xbf16, #tpu.memory_space<vmem>>, vector<1x128x128xbf16>
    %34 = vector.shape_cast %33 : vector<1x128x128xbf16> to vector<128x128xbf16>
    %cst_41 = arith.constant dense<0.000000e+00> : vector<16x128xf32>
    %35 = tpu.matmul %32, %34, %cst_41 {dimension_numbers = #tpu.dot_dimension_numbers<[1], [0], [0], [1], [0, 0, 1, 1], [], []>} : vector<16x128xbf16>, vector<128x128xbf16>, vector<16x128xf32> -> vector<16x128xf32>
    %36 = arith.addf %31, %35 : vector<16x128xf32>
    %c2_42 = arith.constant 2 : index
    %c0_43 = arith.constant 0 : index
    %37 = vector.load %arg8[%c2_42, %c0_43] : memref<18x128xbf16, #tpu.memory_space<vmem>>, vector<16x128xbf16>
    %c2_44 = arith.constant 2 : index
    %c0_45 = arith.constant 0 : index
    %c0_46 = arith.constant 0 : index
    %38 = vector.load %arg3[%c2_44, %c0_45, %c0_46] : memref<3x128x128xbf16, #tpu.memory_space<vmem>>, vector<1x128x128xbf16>
    %39 = vector.shape_cast %38 : vector<1x128x128xbf16> to vector<128x128xbf16>
    %cst_47 = arith.constant dense<0.000000e+00> : vector<16x128xf32>
    %40 = tpu.matmul %37, %39, %cst_47 {dimension_numbers = #tpu.dot_dimension_numbers<[1], [0], [0], [1], [0, 0, 1, 1], [], []>} : vector<16x128xbf16>, vector<128x128xbf16>, vector<16x128xf32> -> vector<16x128xf32>
    %41 = arith.addf %36, %40 : vector<16x128xf32>
    %c0_48 = arith.constant 0 : index
    %c0_49 = arith.constant 0 : index
    %42 = vector.load %arg5[%c0_48, %c0_49] : memref<1x128xf32, #tpu.memory_space<vmem>>, vector<1x128xf32>
    %43 = vector.broadcast %42 : vector<1x128xf32> to vector<16x128xf32>
    %44 = arith.addf %41, %43 : vector<16x128xf32>
    %cst_50 = arith.constant 0.000000e+00 : f32
    %45 = vector.broadcast %cst_50 : f32 to vector<16x128xf32>
    %46 = arith.maximumf %44, %45 : vector<16x128xf32>
    %c0_51 = arith.constant 0 : index
    %c0_52 = arith.constant 0 : index
    %c0_53 = arith.constant 0 : index
    %47 = vector.load %arg6[%c0_51, %c0_52, %c0_53] : memref<1x16x128xf32, #tpu.memory_space<vmem>>, vector<1x16x128xf32>
    %48 = vector.shape_cast %47 : vector<1x16x128xf32> to vector<16x128xf32>
    %49 = vector.shape_cast %46 : vector<16x128xf32> to vector<1x16x128xf32>
    tpu.vector_store %arg6[%c0_51, %c0_52, %c0_53], %49 {strides = array<i32>} : memref<1x16x128xf32, #tpu.memory_space<vmem>>, vector<1x16x128xf32>,
    return
  }
  func.func @transform_0(%arg0: i32) -> (i32, i32, i32) {
    %c0_i32 = arith.constant 0 : i32
    %c0_i32_0 = arith.constant 0 : i32
    %c0_i32_1 = arith.constant 0 : i32
    return %arg0, %c0_i32, %c0_i32_0 : i32, i32, i32
  }
  func.func @transform_1(%arg0: i32) -> (i32, i32, i32) {
    %c0_i32 = arith.constant 0 : i32
    %c0_i32_0 = arith.constant 0 : i32
    %c0_i32_1 = arith.constant 0 : i32
    %c0_i32_2 = arith.constant 0 : i32
    return %c0_i32, %c0_i32_0, %c0_i32_1 : i32, i32, i32
  }
  func.func @transform_2(%arg0: i32) -> (i32, i32, i32) {
    %c0_i32 = arith.constant 0 : i32
    %c0_i32_0 = arith.constant 0 : i32
    %c0_i32_1 = arith.constant 0 : i32
    %c0_i32_2 = arith.constant 0 : i32
    return %c0_i32, %c0_i32_0, %c0_i32_1 : i32, i32, i32
  }
  func.func @transform_3(%arg0: i32) -> (i32, i32) {
    %c0_i32 = arith.constant 0 : i32
    %c0_i32_0 = arith.constant 0 : i32
    %c0_i32_1 = arith.constant 0 : i32
    return %c0_i32, %c0_i32_0 : i32, i32
  }
  func.func @transform_4(%arg0: i32) -> (i32, i32) {
    %c0_i32 = arith.constant 0 : i32
    %c0_i32_0 = arith.constant 0 : i32
    %c0_i32_1 = arith.constant 0 : i32
    return %c0_i32, %c0_i32_0 : i32, i32
  }
  func.func @transform_5(%arg0: i32) -> (i32, i32, i32) {
    %c0_i32 = arith.constant 0 : i32
    %c0_i32_0 = arith.constant 0 : i32
    %c0_i32_1 = arith.constant 0 : i32
    return %arg0, %c0_i32, %c0_i32_0 : i32, i32, i32
  }
}

</mosaic_0001>

<bundles_post_ra>
// kernel: tile.13
= control target key start
LH: loop header
LB: loop body
LE: loop exit
PB: predicated region body
PF: predicated region fallthrough
CT: control target
= control target key end

     0   :  { %s28_s0 = inlined_call_operand.vmem [shape: f32[8], index: 0, kind: input, shape index: {}]   ;;  %s29_s1 = inlined_call_operand.vmem [shape: f32[16,8], index: 1, kind: output, shape index: {}]  }
   0x1   :  { %v4_v0 = vld [vmem:[%s28_s0] ss:$0 sm:$0xff] }
   0x2   :  { %5 = vst [vmem:[%s29_s1] sm:$0xff] %v4_v0 }
   0x3   :  { %8 = vst [vmem:[%s29_s1 + $0x8] sm:$0xff] %v4_v0 }

// kernel: tile.14
= control target key start
LH: loop header
LB: loop body
LE: loop exit
PB: predicated region body
PF: predicated region fallthrough
CT: control target
= control target key end

     0   :  { %s131_s10 = smov 120   ;;  %s132_s11 = smov 104   ;;  %vm3_vm0 = vcmask 64512   ;;  %vm9_vm1 = vcmask 1048512   ;;  %vm15_vm2 = vcmask 982912   ;;  %vm21_vm3 = vcmask 917312   ;;  %s207_s0 = inlined_call_operand.vmem [shape: f32[16,8], index: 0, kind: input, shape index: {}]   ;;  %s208_s1 = inlined_call_operand.vmem [shape: f32[1,128], index: 1, kind: output, shape index: {}]  }
   0x1   :  { %v101_v0 = vld [vmem:[%s207_s0 + $0xf] sm:$0x1]   ;;  %v103_v1 = vld [vmem:[%s207_s0 + $0xd] sm:$0x1]   ;;  %v105_v2 = vld [vmem:[%s207_s0 + $0xb] sm:$0x1]  }
   0x2   :  { %7 = vrot.lane.b32.xlu0 %v101_v0, %s131_s10  ;;  %19 = vrot.lane.b32.xlu1 %v103_v1, %s132_s11  ;;  %s133_s14 = smov 88   ;;  %v102_v3 = vld [vmem:[%s207_s0 + $0xe] sm:$0x1]   ;;  %v104_v4 = vld [vmem:[%s207_s0 + $0xc] sm:$0x1]   ;;  %s134_s19 = smov 112  }
   0x3   :  { %31 = vrot.lane.b32.xlu2 %v105_v2, %s133_s14  ;;  %s135_s20 = smov 96   ;;  %v106_v5 = vld [vmem:[%s207_s0 + $0xa] sm:$0x1]   ;;  %s136_s23 = smov 80   ;;  %v107_v6 = vld [vmem:[%s207_s0 + $0x9] sm:$0x1]  }
   0x4   :  { %v108_v7 = vld [vmem:[%s207_s0 + $0x8] sm:$0x1]   ;;  %s137_s28 = smov 72   ;;  %s138_s29 = smov 64   ;;  %v109_v8 = vld [vmem:[%s207_s0 + $0x7] sm:$0x1]  }
   0x5   :  { %s139_s3 = smov 56   ;;  %v110_v9 = vld [vmem:[%s207_s0 + $0x6] sm:$0x1]   ;;  %v111_v10 = vld [vmem:[%s207_s0 + $0x5] sm:$0x1]   ;;  %s140_s8 = smov 48  }
   0x6   :  { %s141_s9 = smov 40   ;;  %v112_v11 = vld [vmem:[%s207_s0 + $0x4] sm:$0x1]   ;;  %s142_s12 = smov 32   ;;  %v113_v12 = vld [vmem:[%s207_s0 + $0x3] sm:$0x1]  }
   0x7   :  { %v114_v13 = vld [vmem:[%s207_s0 + $0x2] sm:$0x1]   ;;  %s143_s17 = smov 24   ;;  %s144_s18 = smov 16   ;;  %v115_v14 = vld [vmem:[%s207_s0 + $0x1] sm:$0x1]  }
   0x8   :  { %s145_s21 = smov 8   ;;  %v2_v15 = vld [vmem:[%s207_s0] sm:$0x1]   ;;  %vm27_vm4 = vcmask 851712   ;;  %vm33_vm5 = vcmask 786112   ;;  %vm39_vm6 = vcmask 720512  }
   0x9   :  { %4 = vst.msk [vmem:[#allocation0] sm:$0x1] %vm3_vm0, %v2_v15   ;;  %vm45_vm7 = vcmask 654912   ;;  %vm51_vm8 = vcmask 589312   ;;  %vm57_vm9 = vcmask 523712   ;;  %vm63_vm10 = vcmask 458112  }
   0xa   :  { %13 = vrot.lane.b32.xlu0 %v102_v3, %s134_s19  ;;  %25 = vrot.lane.b32.xlu1 %v104_v4, %s135_s20  ;;  %vm69_vm11 = vcmask 392512   ;;  %vm75_vm12 = vcmask 326912   ;;  %vm81_vm13 = vcmask 261312   ;;  %vm87_vm14 = vcmask 195712  }
   0xb   :  { %37 = vrot.lane.b32.xlu2 %v106_v5, %s136_s23  ;;  %vm93_vm15 = vcmask 130112  }
  0x12   :  { %43 = vrot.lane.b32.xlu0 %v107_v6, %s137_s28  ;;  %49 = vrot.lane.b32.xlu1 %v108_v7, %s138_s29 }
  0x13   :  { %55 = vrot.lane.b32.xlu2 %v109_v8, %s139_s3 }
  0x1a   :  { %61 = vrot.lane.b32.xlu0 %v110_v9, %s140_s8  ;;  %67 = vrot.lane.b32.xlu1 %v111_v10, %s141_s9 }
  0x1b   :  { %73 = vrot.lane.b32.xlu2 %v112_v11, %s142_s12 }
  0x22   :  { %79 = vrot.lane.b32.xlu0 %v113_v12, %s143_s17  ;;  %85 = vrot.lane.b32.xlu1 %v114_v13, %s144_s18 }
  0x23   :  { %91 = vrot.lane.b32.xlu2 %v115_v14, %s145_s21 }
  0x5d   :  { %v32_v16 = vpop.permute.xlu2 %31  }
  0x65   :  { %v38_v17 = vpop.permute.xlu2 %37  }
  0x6d   :  { %v56_v18 = vpop.permute.xlu2 %55  }
  0x74   :  { %v8_v19 = vpop.permute.xlu0 %7   ;;  %v20_v20 = vpop.permute.xlu1 %19  }
  0x75   :  { %10 = vst.msk [vmem:[#allocation0] sm:$0x1] %vm9_vm1, %v8_v19   ;;  %v74_v21 = vpop.permute.xlu2 %73  }
  0x7c   :  { %v14_v22 = vpop.permute.xlu0 %13   ;;  %v26_v23 = vpop.permute.xlu1 %25  }
  0x7d   :  { %16 = vst.msk [vmem:[#allocation0] sm:$0x1] %vm15_vm2, %v14_v22   ;;  %v92_v24 = vpop.permute.xlu2 %91  }
  0x7e   :  { %22 = vst.msk [vmem:[#allocation0] sm:$0x1] %vm21_vm3, %v20_v20  }
  0x7f   :  { %28 = vst.msk [vmem:[#allocation0] sm:$0x1] %vm27_vm4, %v26_v23  }
  0x80   :  { %34 = vst.msk [vmem:[#allocation0] sm:$0x1] %vm33_vm5, %v32_v16  }
  0x81   :  { %40 = vst.msk [vmem:[#allocation0] sm:$0x1] %vm39_vm6, %v38_v17  }
  0x84   :  { %v44_v25 = vpop.permute.xlu0 %43   ;;  %v50_v26 = vpop.permute.xlu1 %49  }
  0x85   :  { %46 = vst.msk [vmem:[#allocation0] sm:$0x1] %vm45_vm7, %v44_v25  }
  0x86   :  { %52 = vst.msk [vmem:[#allocation0] sm:$0x1] %vm51_vm8, %v50_v26  }
  0x87   :  { %58 = vst.msk [vmem:[#allocation0] sm:$0x1] %vm57_vm9, %v56_v18  }
  0x8c   :  { %v62_v27 = vpop.permute.xlu0 %61   ;;  %v68_v28 = vpop.permute.xlu1 %67  }
  0x8d   :  { %64 = vst.msk [vmem:[#allocation0] sm:$0x1] %vm63_vm10, %v62_v27  }
  0x8e   :  { %70 = vst.msk [vmem:[#allocation0] sm:$0x1] %vm69_vm11, %v68_v28  }
  0x8f   :  { %76 = vst.msk [vmem:[#allocation0] sm:$0x1] %vm75_vm12, %v74_v21  }
  0x94   :  { %v80_v29 = vpop.permute.xlu0 %79   ;;  %v86_v30 = vpop.permute.xlu1 %85  }
  0x95   :  { %82 = vst.msk [vmem:[#allocation0] sm:$0x1] %vm81_vm13, %v80_v29  }
  0x96   :  { %88 = vst.msk [vmem:[#allocation0] sm:$0x1] %vm87_vm14, %v86_v30  }
  0x97   :  { %94 = vst.msk [vmem:[#allocation0] sm:$0x1] %vm93_vm15, %v92_v24  }
  0x9e   :  { %v97_v31 = vld [vmem:[#allocation0] sm:$0x1] }
  0x9f   :  { %100 = vst [vmem:[%s208_s1] sm:$0x1] %v97_v31 }

// kernel: encoder_block_forward.1
= control target key start
LH: loop header
LB: loop body
LE: loop exit
PB: predicated region body
PF: predicated region fallthrough
CT: control target
= control target key end

     0   :  { %s1139_s18 = smov 0   ;;  %s1306_s0 = inlined_call_operand.vmem [shape: bf16[2,16,64], index: 0, kind: input, shape index: {}]   ;;  %s1307_s1 = inlined_call_operand.vmem [shape: bf16[3,64,128], index: 1, kind: input, shape index: {}]   ;;  %s1308_s2 = inlined_call_operand.vmem [shape: bf16[3,128,128], index: 2, kind: input, shape index: {}]   ;;  %s1309_s3 = inlined_call_operand.vmem [shape: f32[1,128], index: 3, kind: input, shape index: {}]   ;;  %s1310_s4 = inlined_call_operand.vmem [shape: f32[1,128], index: 4, kind: input, shape index: {}]   ;;  %s1311_s5 = inlined_call_operand.vmem [shape: f32[2,16,128], index: 5, kind: output, shape index: {}]  }
   0x1 LB: > { %s831_s19 = sadd.s32 4294967295, %s1106_s18   ;;  %p835_p0 = scmp.ge.s32.totalorder %s1106_s18, 1  ;;  %s1106_s18 = sphi %s1139_s18, %s15_s18  }
   0x2   : > { %p187_p1 = scmp.lt.s32.totalorder %s1106_s18, 3 }
   0x4   : > { %p188_p2 = pnand %p835_p0, %p187_p1 }
   0x5   : > { %p215_p3 = scmp.lt.s32.totalorder (!%p188_p2), %s831_s19, 1 }
   0x6   : > { %191 = sbr.rel (%p188_p2) target bundleno = 380 (0x17c), region = 40 }
   0xb   : > { %v1046_v0 = vld [vmem:[%s1307_s1 + $0x38] sm:$0xff]  ;;  %vm226_vm0 = vcmask 519168   ;;  %v1108_v2 = vmov 0   ;;  %vm229_vm1 = vcmask 516096   ;;  %v1045_v3 = vld [vmem:[%s1307_s1 + $0x30] sm:$0xff]  ;;  %s1317_s19 = smov (!%p215_p3, %s831_s19), 1 }
   0xc   : > { %v1042_v1 = vld [vmem:[%s1307_s1 + $0x18] sm:$0xff]  ;;  %227 = vst.msk [vmem:[#allocation2] sm:$0xf] %vm226_vm0, %v1108_v2  ;;  %341 = vmatpush.bf16.msra.mxu2 %v1046_v0  ;;  %v1041_v4 = vld [vmem:[%s1307_s1 + $0x10] sm:$0xff]  ;;  %v1044_v5 = vld [vmem:[%s1307_s1 + $0x28] sm:$0xff]  ;;  %s1037_s7 = sshll.u32 %s1317_s19, 3 }
   0xd   : > { %381 = vmatpush.bf16.msra.mxu1 %v1042_v1  ;;  %228 = vst.msk [vmem:[#allocation2 + $0x4] sm:$0xf] %vm226_vm0, %v1108_v2  ;;  %v1040_v6 = vld [vmem:[%s1307_s1 + $0x8] sm:$0xff]  ;;  %vm233_vm2 = vsmask.f32 256  ;;  %s219_s10 = scalar_lea.vmem %s1306_s0, %s1037_s7  ;;  %v1043_v15 = vld [vmem:[%s1307_s1 + $0x20] sm:$0xff] }
   0xe   : > { %230 = vst.msk [vmem:[#allocation2 + $0x8] sm:$0x1] %vm229_vm1, %v1108_v2  ;;  %vm234_vm3 = vsmask.f32 4368  ;;  %vm257_vm4 = vsmask.f32 7938  ;;  %vm1176_vm5 = vmand %vm229_vm1, %vm233_vm2 }
   0xf   : > { %459 = vst [vmem:[#allocation3] sm:$0xf] %v1108_v2  ;;  %v231_v7 = vld [vmem:[%s219_s10] sm:$0xf]  ;;  %v232_v8 = vld [vmem:[%s219_s10 + $0x4] sm:$0xf]  ;;  %vm1181_vm6 = vmor %vm233_vm2, %vm234_vm3 }
  0x10   : > { %460 = vst [vmem:[#allocation3 + $0x4] sm:$0xf] %v1108_v2  ;;  %342 = vmatpush.bf16.msra.mxu2 %v1045_v3  ;;  %v237_v9 = vshrl.u32 %v231_v7, 16  ;;  %v240_v10 = vshll.u32 %v231_v7, 16  ;;  %v245_v11 = vshrl.u32 %v232_v8, 16  ;;  %v248_v12 = vshll.u32 %v232_v8, 16  ;;  %vm258_vm7 = vmand %vm226_vm0, %vm257_vm4 }
  0x11   : > { %382 = vmatpush.bf16.msra.mxu1 %v1041_v4  ;;  %461 = vst [vmem:[#allocation3 + $0x8] sm:$0x1] %v1108_v2  ;;  %v1039_v20 = vld [vmem:[%s1307_s1] sm:$0xff]  ;;  %v1050_v25 = vld [vmem:[%s1307_s1 + $0x58] sm:$0xff]  ;;  %v1049_v29 = vld [vmem:[%s1307_s1 + $0x50] sm:$0xff]  ;;  %vm333_vm8 = vcmask 523264  }
  0x12   : > { %v239_v16 = vrot.slane %v237_v9, 7  ;;  %v247_v17 = vrot.slane %v245_v11, 7  ;;  %v1048_v30 = vld [vmem:[%s1307_s1 + $0x48] sm:$0xff]  ;;  %v1047_v34 = vld [vmem:[%s1307_s1 + $0x40] sm:$0xff]  ;;  %vm296_vm9 = vsmask.f32 7424 }
  0x13   : > { %v259_v18 = vld [vmem:[#allocation2] sm:$0xf]  ;;  %vm404_vm10 = vcmask 1046528   ;;  %v1058_v49 = vld [vmem:[%s1308_s2 + $0x38] sm:$0xff]  ;;  %v1057_v50 = vld [vmem:[%s1308_s2 + $0x30] sm:$0xff]  ;;  %vm484_vm11 = vcmask 1043456  }
  0x14   : > { %343 = vmatpush.bf16.msra.mxu2 %v1044_v5  ;;  %v242_v21 = vor.u32 %v240_v10, %v239_v16  ;;  %v243_v22 = vrot.slane %v239_v16, 4  ;;  %v250_v23 = vor.u32 %v248_v12, %v247_v17  ;;  %v252_v24 = vrot.slane %v247_v17, 4  ;;  %663 = vmatpush.bf16.msra.mxu0 %v1058_v49  ;;  %v1074_v51 = vld [vmem:[%s1308_s2 + $0xb8] sm:$0xff]  ;;  %v1056_v52 = vld [vmem:[%s1308_s2 + $0x28] sm:$0xff]  ;;  %v1073_v54 = vld [vmem:[%s1308_s2 + $0xb0] sm:$0xff]  ;;  %s1038_s6 = sshll.u32 %s1317_s19, 4 }
  0x15   : > { %383 = vmatpush.bf16.msra.mxu1 %v1040_v6  ;;  %v265_v19 = vld [vmem:[#allocation2 + $0x8] sm:$0x1]  ;;  %v1066_v53 = vld [vmem:[%s1308_s2 + $0x78] sm:$0xff]  ;;  %v1055_v55 = vld [vmem:[%s1308_s2 + $0x20] sm:$0xff]  ;;  %vm490_vm13 = vcmask 1040384   ;;  %s224_s9 = scalar_lea.vmem %s1311_s5, %s1038_s6 }
  0x16   : > { %v251_v26 = vsel %vm1181_vm6, %v243_v22, %v250_v23  ;;  %v260_v27 = vsel %vm258_vm7, %v242_v21, %v259_v18  ;;  %v266_v28 = vsel %vm1176_vm5, %v252_v24, %v265_v19  ;;  %600 = vmatpush.bf16.msra.mxu3 %v1066_v53  ;;  %v1065_v56 = vld [vmem:[%s1308_s2 + $0x70] sm:$0xff]  ;;  %v1072_v57 = vld [vmem:[%s1308_s2 + $0xa8] sm:$0xff]  ;;  %v1054_v59 = vld [vmem:[%s1308_s2 + $0x18] sm:$0xff] }
  0x17   : > { %261 = vst [vmem:[#allocation2] sm:$0xf] %v260_v27  ;;  %v1064_v60 = vld [vmem:[%s1308_s2 + $0x68] sm:$0xff]  ;;  %v1071_v61 = vld [vmem:[%s1308_s2 + $0xa0] sm:$0xff]  ;;  %v1053_v62 = vld [vmem:[%s1308_s2 + $0x10] sm:$0xff] }
  0x18   : > { %344 = vmatpush.bf16.msra.mxu2 %v1043_v15  ;;  %262 = vst.msk [vmem:[#allocation2 + $0x4] sm:$0xf] %vm226_vm0, %v251_v26  ;;  %664 = vmatpush.bf16.msra.mxu0 %v1057_v50  ;;  %v1063_v63 = vld [vmem:[%s1308_s2 + $0x60] sm:$0xff]  ;;  %v1070_v0 = vld [vmem:[%s1308_s2 + $0x98] sm:$0xff]  ;;  %v1052_v2 = vld [vmem:[%s1308_s2 + $0x8] sm:$0xff] }
  0x19   : > { %384 = vmatpush.bf16.msra.mxu1 %v1039_v20  ;;  %267 = vst [vmem:[#allocation2 + $0x8] sm:$0x1] %v266_v28  ;;  %v1062_v3 = vld [vmem:[%s1308_s2 + $0x58] sm:$0xff]  ;;  %v1069_v4 = vld [vmem:[%s1308_s2 + $0x90] sm:$0xff]  ;;  %v1051_v6 = vld [vmem:[%s1308_s2] sm:$0xff] }
  0x1a   : > { %601 = vmatpush.bf16.msra.mxu3 %v1065_v56  ;;  %v1061_v7 = vld [vmem:[%s1308_s2 + $0x50] sm:$0xff]  ;;  %v1098_v9 = vld [vmem:[%s1309_s3] ss:$0 sm:$0xff]  ;;  %v1068_v10 = vld [vmem:[%s1308_s2 + $0x88] sm:$0xff] }
  0x1b   : > { %v1060_v13 = vld [vmem:[%s1308_s2 + $0x48] sm:$0xff]  ;;  %v1067_v15 = vld [vmem:[%s1308_s2 + $0x80] sm:$0xff]  ;;  %vm485_vm12 = vmand %vm484_vm11, %vm257_vm4 }
  0x1c   : > { %439 = vmatpush.bf16.msrb.mxu2 %v1050_v25  ;;  %665 = vmatpush.bf16.msra.mxu0 %v1056_v52  ;;  %v1059_v17 = vld [vmem:[%s1308_s2 + $0x40] sm:$0xff]  ;;  %v486_v28 = vld [vmem:[#allocation3] sm:$0xf]  ;;  %vm491_vm14 = vmand %vm490_vm13, %vm233_vm2 }
  0x1d   : > { %750 = vmatpush.bf16.msrb.mxu1 %v1074_v51 }
  0x1e   : > { %v1084_v44 = vld [vmem:[#allocation2] sm:$0xe]  ;;  %602 = vmatpush.bf16.msra.mxu3 %v1064_v60 }
  0x1f   : > { %v1076_v31 = vld [vmem:[#allocation2] sm:$0xff]  }
  0x20   : > { %440 = vmatpush.bf16.msrb.mxu2 %v1049_v29  ;;  %v278_v32 = vld [vmem:[#allocation2 + $0x8] sm:$0x1]  ;;  %v300_v33 = vshll.u32 %v1076_v31, 16  ;;  %881 = vmatmul.msk.bf16.vlgmr.msra.gmra.mxu1 %vm333_vm8, %v1076_v31  ;;  %v298_v36 = vshrl.u32 %v1076_v31, 16  ;;  %v1083_v43 = vld [vmem:[#allocation2] sm:$0xf0] }
  0x21   : > { %v293_v35 = vunpack.c.l.b16 %v278_v32  ;;  %v1085_v45 = vor.u32 %v1084_v44, %v1083_v43  ;;  %751 = vmatpush.bf16.msrb.mxu1 %v1073_v54  ;;  %666 = vmatpush.bf16.msra.mxu0 %v1055_v55 }
  0x22   : > { %v302_v37 = vrot.slane %v300_v33, 1  ;;  %603 = vmatpush.bf16.msra.mxu3 %v1063_v63 }
  0x23   : > { %v295_v38 = vpack.c.b16 %v293_v35, %v293_v35  ;;  %v405_v46 = vrot.slane %v1085_v45, 1 }
  0x24   : > { %441 = vmatpush.bf16.msrb.mxu2 %v1048_v30  ;;  %v303_v39 = vor.u32 %v302_v37, %v298_v36  ;;  %v492_v36 = vld [vmem:[#allocation3 + $0x8] sm:$0x1] }
  0x25   : > { %v305_v40 = vshll.u32 %v295_v38, 16  ;;  %v406_v47 = vrot.slane %v295_v38, 1  ;;  %752 = vmatpush.bf16.msrb.mxu1 %v1072_v57  ;;  %667 = vmatpush.bf16.msra.mxu0 %v1054_v59 }
  0x26   : > { %604 = vmatpush.bf16.msra.mxu3 %v1062_v3 }
  0x27   : > { %v307_v41 = vrot.slane %v305_v40, 1  ;;  %v407_v48 = vsel %vm404_vm10, %v405_v46, %v406_v47 }
  0x28   : > { %442 = vmatpush.bf16.msrb.mxu2 %v1047_v34 }
  0x29   : > { %v308_v42 = vsel %vm296_vm9, %v303_v39, %v307_v41  ;;  %753 = vmatpush.bf16.msrb.mxu1 %v1071_v61  ;;  %668 = vmatpush.bf16.msra.mxu0 %v1053_v62  ;;  %v1099_v62 = vld [vmem:[%s1310_s4] ss:$0 sm:$0xff] }
  0x2a   : > { %864 = vmatmul.msk.bf16.vlgmr.msra.gmra.mxu2 %vm333_vm8, %v308_v42  ;;  %605 = vmatpush.bf16.msra.mxu3 %v1061_v7 }
  0x2d   : > { %754 = vmatpush.bf16.msrb.mxu1 %v1070_v0  ;;  %669 = vmatpush.bf16.msra.mxu0 %v1052_v2 }
  0x2e   : > { %606 = vmatpush.bf16.msra.mxu3 %v1060_v13 }
  0x31   : > { %755 = vmatpush.bf16.msrb.mxu1 %v1069_v4  ;;  %670 = vmatpush.bf16.msra.mxu0 %v1051_v6 }
  0x32   : > { %607 = vmatpush.bf16.msra.mxu3 %v1059_v17 }
  0x35   : > { %756 = vmatpush.bf16.msrb.mxu1 %v1068_v10 }
  0x39   : > { %757 = vmatpush.bf16.msrb.mxu1 %v1067_v15 }
  0x3a   : > { %906 = vmatmul.msk.bf16.vlgmr.msrb.gmra.mxu2 %vm333_vm8, %v407_v48 }
  0x9d   : > { %v386_v5 = vpop.f32.mrf.mxu1 }
  0xa5   : > { %v388_v18 = vpop.f32.mrf.mxu1 }
  0xad   : > { %v346_v58 = vpop.f32.mrf.mxu2 }
  0xae   : > { %v387_v8 = vadd.f32 %v386_v5, %v346_v58 }
  0xb5   : > { %v348_v1 = vpop.f32.mrf.mxu2 }
  0xb6   : > { %v389_v20 = vadd.f32 %v388_v18, %v348_v1 }
  0xbd   : > { %v444_v11 = vpop.f32.mrf.mxu2 }
  0xbe   : > { %v449_v12 = vadd.f32 %v444_v11, %v387_v8 }
  0xc0   : > { %v455_v16 = vadd.f32 %v1098_v9, %v449_v12 }
  0xc2   : > { %v457_v19 = vmax.f32 %v455_v16, 0.0 }
  0xc4   : > { %v462_v21 = vpack.c.bf16 %v457_v19, %v457_v19 }
  0xc5   : > { %v446_v22 = vpop.f32.mrf.mxu2 }
  0xc6   : > { %v465_v23 = vshrl.u32 %v462_v21, 16  ;;  %v450_v24 = vadd.f32 %v446_v22, %v389_v20  ;;  %v468_v26 = vshll.u32 %v462_v21, 16 }
  0xc8   : > { %v467_v25 = vrot.slane %v465_v23, 7  ;;  %v456_v27 = vadd.f32 %v1098_v9, %v450_v24 }
  0xca   : > { %v470_v29 = vor.u32 %v468_v26, %v467_v25  ;;  %v458_v30 = vmax.f32 %v456_v27, 0.0  ;;  %v471_v37 = vrot.slane %v467_v25, 4 }
  0xcc   : > { %v487_v31 = vsel %vm485_vm12, %v470_v29, %v486_v28  ;;  %v463_v32 = vpack.c.bf16 %v458_v30, %v458_v30 }
  0xcd   : > { %488 = vst [vmem:[#allocation3] sm:$0xf] %v487_v31 }
  0xce   : > { %v473_v33 = vshrl.u32 %v463_v32, 16  ;;  %v476_v35 = vshll.u32 %v463_v32, 16 }
  0xd0   : > { %v475_v34 = vrot.slane %v473_v33, 7 }
  0xd2   : > { %v478_v38 = vor.u32 %v476_v35, %v475_v34  ;;  %v480_v39 = vrot.slane %v475_v34, 4 }
  0xd4   : > { %v479_v40 = vsel %vm1181_vm6, %v471_v37, %v478_v38  ;;  %v493_v41 = vsel %vm491_vm14, %v480_v39, %v492_v36  ;;  %v1087_v46 = vld [vmem:[#allocation3] sm:$0xe] }
  0xd5   : > { %489 = vst [vmem:[#allocation3 + $0x4] sm:$0xf] %v479_v40 }
  0xd6   : > { %494 = vst [vmem:[#allocation3 + $0x8] sm:$0x1] %v493_v41 }
  0xdc   : > { %v1080_v42 = vld [vmem:[#allocation3] sm:$0xff]  }
  0xdd   : > { %v1086_v43 = vld [vmem:[#allocation3] sm:$0xf0]  ;;  %v542_v44 = vshll.u32 %v1080_v42, 16  ;;  %671 = vmatmul.bf16.vlgmr.msra.gmra.mxu0 %v1080_v42  ;;  %v513_v45 = vld [vmem:[#allocation3 + $0x8] sm:$0x1]  ;;  %v540_v51 = vshrl.u32 %v1080_v42, 16 }
  0xde   : > { %v536_v47 = vunpack.c.l.b16 %v513_v45  ;;  %v1088_v48 = vor.u32 %v1087_v46, %v1086_v43 }
  0xdf   : > { %v544_v49 = vrot.slane %v542_v44, 1 }
  0xe0   : > { %v538_v50 = vpack.c.b16 %v536_v47, %v536_v47  ;;  %v698_v52 = vrot.slane %v1088_v48, 1 }
  0xe1   : > { %v545_v55 = vor.u32 %v544_v49, %v540_v51 }
  0xe2   : > { %v699_v53 = vrot.slane %v538_v50, 1  ;;  %v547_v54 = vshll.u32 %v538_v50, 16 }
  0xe4   : > { %v700_v14 = vsel %vm404_vm10, %v698_v52, %v699_v53  ;;  %v549_v56 = vrot.slane %v547_v54, 1 }
  0xe5   : > { %758 = vmatmul.bf16.vlgmr.msrb.gmra.mxu1 %v700_v14 }
  0xe6   : > { %v550_v57 = vsel %vm296_vm9, %v545_v55, %v549_v56 }
  0xe7   : > { %608 = vmatmul.bf16.vlgmr.msra.gmra.mxu3 %v550_v57 }
 0x15a   : > { %v672_v58 = vpop.f32.mrf.mxu0 }
 0x162   : > { %v759_v59 = vpop.f32.mrf.mxu1  ;;  %v674_v2 = vpop.f32.mrf.mxu0 }
 0x16a   : > { %v609_v60 = vpop.f32.mrf.mxu3  ;;  %v761_v5 = vpop.f32.mrf.mxu1 }
 0x16b   : > { %v673_v61 = vadd.f32 %v672_v58, %v609_v60 }
 0x16d   : > { %v764_v63 = vadd.f32 %v759_v59, %v673_v61 }
 0x16f   : > { %v770_v0 = vadd.f32 %v1099_v62, %v764_v63 }
 0x171   : > { %v772_v1 = vmax.f32 %v770_v0, 0.0 }
 0x172   : > { %v611_v3 = vpop.f32.mrf.mxu3 }
 0x173   : > { %774 = vst [vmem:[%s224_s9] sm:$0xff] %v772_v1  ;;  %v675_v4 = vadd.f32 %v674_v2, %v611_v3 }
 0x175   : > { %v765_v6 = vadd.f32 %v761_v5, %v675_v4 }
 0x177   : > { %v771_v7 = vadd.f32 %v1099_v62, %v765_v6 }
 0x179   : > { %v773_v8 = vmax.f32 %v771_v7, 0.0 }
 0x17b   : > { %775 = vst [vmem:[%s224_s9 + $0x8] sm:$0xff] %v773_v8 }
 0x17c PF: > { %s15_s18 = sadd.s32 1, %s1106_s18  }
 0x17d   : > { %p12_p4 = scmp.ge.s32.totalorder %s15_s18, 4  }
 0x17f   :  { %14 = sbr.rel (!%p12_p4) target bundleno = 1 (0x1), region = 74 }

</bundles_post_ra>
